<compile_context>
chip_gen: v7x
topology: tpu7x:2x2x1
jax: 0.10.0
libtpu: 0.0.40
codegen_flags: <defaults>
</compile_context>

<pallas_src>
import jax
import jax.numpy as jnp
from jax.experimental import pallas as pl
from jax.experimental.pallas import tpu as pltpu


PACK = 8  # original rows packed into one lane-dense row (8 * M = 128 lanes)


def _round_up(n, m):
    return ((n + m - 1) // m) * m


def _fcnet_kernel(x_ref, w1_ref, b1_ref, w2_ref, b2_ref, o_ref):
    """One batch tile of the packed MLP.

    Shapes (KM = PACK*M, KH = PACK*H, KC = PACK*C):
      x_ref : (tbp, KM)  lane-dense packed activations (pipelined stream)
      w1_ref: (KM, KH)   block-diagonal layer-1 weight (VMEM resident)
      b1_ref: (1,  KH)   f32 bias, tiled PACK times
      w2_ref: (KH, KC)   block-diagonal layer-2 weight (VMEM resident)
      b2_ref: (1,  KC)   f32 bias, tiled PACK times
      o_ref : (tbp, KC)  lane-dense packed output
    """
    # Layer 1: MXU matmul with f32 accumulation.
    h = jnp.dot(x_ref[...], w1_ref[...], preferred_element_type=jnp.float32)
    h = h + b1_ref[...]                      # bias broadcast (f32, VPU)
    h = jnp.where(h > 0, h, 0.05 * h)        # LeakyReLU(0.05) (f32, VPU; v5e-safe)
    # Layer 2: match weight dtype on the MXU inputs, accumulate in f32.
    y = jnp.dot(h.astype(w2_ref.dtype), w2_ref[...],
                preferred_element_type=jnp.float32)
    y = y + b2_ref[...]
    o_ref[...] = y.astype(o_ref.dtype)


def pack_fcnet_params(W1, b1, W2, b2, *, dtype=jnp.float32):
    """Pack torch-layout params (W: (out, in), b: (out,)) into the block-
    diagonal lane-dense layout the kernel consumes.  Tiny, one-time cost."""
    H, M = W1.shape
    C, _ = W2.shape
    eye = jnp.eye(PACK, dtype=jnp.float32)
    w1p = jnp.kron(eye, W1.T.astype(jnp.float32)).astype(dtype)  # (PACK*M, PACK*H)
    w2p = jnp.kron(eye, W2.T.astype(jnp.float32)).astype(dtype)  # (PACK*H, PACK*C)
    b1p = jnp.tile(b1.astype(jnp.float32), PACK).reshape(1, PACK * H)
    b2p = jnp.tile(b2.astype(jnp.float32), PACK).reshape(1, PACK * C)
    return w1p, b1p, w2p, b2p


def fcnet_forward_packed(x, w1p, b1p, w2p, b2p, *, block_rows=16384,
                         out_dtype=None):
    """FCNet forward on pre-packed (block-diagonal) params.

    x : (B, M) activations.  No dtype cast is performed here -- the dominant
        HBM stream keeps whatever precision the caller hands in (pass bf16 x
        for halved activation traffic).
    Returns (B, C) in `out_dtype` (defaults to x.dtype).
    """
    B, M = x.shape
    KM, KH = w1p.shape
    KC = w2p.shape[1]
    assert KM == PACK * M, "packed weights do not match input feature dim"
    H = KH // PACK
    C = KC // PACK

    out_dtype = jnp.dtype(x.dtype if out_dtype is None else out_dtype)

    # Lane-dense packing: (B, M) -> (bp, PACK*M) is a free row-major reshape.
    # Only batches that are not a multiple of PACK (or tiny batches) pay one
    # extra pad/slice pass; common batch sizes hit the zero-copy path.
    b_pad = max(_round_up(B, PACK), PACK * 8)
    x_in = x if b_pad == B else jnp.pad(x, ((0, b_pad - B), (0, 0)))
    bp = b_pad // PACK
    xp = x_in.reshape(bp, KM)

    # Batch tile in packed rows: multiple of 8 sublanes, never larger than the
    # packed array, big enough that per-step DMA time >> ~0.35us step overhead.
    tbp = max(8, (block_rows // PACK // 8) * 8)
    tbp = min(tbp, (bp // 8) * 8)
    n_blocks = pl.cdiv(bp, tbp)
    if n_blocks == 1 and bp >= 16:
        # Give the pipeline (and v7x's two TensorCores) at least two blocks.
        tbp = max(8, _round_up(pl.cdiv(bp, 2), 8))
        n_blocks = pl.cdiv(bp, tbp)

    # VMEM budget: double-buffered x/out blocks + resident weights + f32 h.
    x_item = jnp.dtype(x.dtype).itemsize
    w_item = jnp.dtype(w1p.dtype).itemsize
    vmem_bytes = (2 * tbp * (KM * x_item + KC * out_dtype.itemsize)
                  + (KM * KH + KH * KC) * w_item
                  + (KH + KC) * 4
                  + tbp * KH * 4          # f32 intermediate h
                  + (1 << 20))            # slack
    vmem_limit = max(int(vmem_bytes), 32 * 1024 * 1024)

    cost = pl.CostEstimate(
        flops=2 * bp * (KM * KH + KH * KC),
        transcendentals=0,
        bytes_accessed=(bp * KM * x_item
                        + (KM * KH + KH * KC) * w_item
                        + (KH + KC) * 4
                        + bp * KC * out_dtype.itemsize),
    )

    out_p = pl.pallas_call(
        _fcnet_kernel,
        out_shape=jax.ShapeDtypeStruct((bp, KC), out_dtype),
        grid=(n_blocks,),
        in_specs=[
            # x: tiled along (packed) batch -> auto double-buffered stream.
            pl.BlockSpec((tbp, KM), lambda i: (i, 0)),
            # Weights & biases: constant block index -> VMEM resident.
            pl.BlockSpec((KM, KH), lambda i: (0, 0)),
            pl.BlockSpec((1, KH), lambda i: (0, 0)),
            pl.BlockSpec((KH, KC), lambda i: (0, 0)),
            pl.BlockSpec((1, KC), lambda i: (0, 0)),
        ],
        out_specs=pl.BlockSpec((tbp, KC), lambda i: (i, 0)),
        compiler_params=pltpu.CompilerParams(
            dimension_semantics=("parallel",),
            vmem_limit_bytes=vmem_limit),
        cost_estimate=cost,
    )(xp, w1p, b1p, w2p, b2p)

    out = out_p.reshape(b_pad, C)          # free row-major reshape back
    if b_pad != B:
        out = out[:B]
    return out


def fcnet_forward(x, W1, b1, W2, b2, *, block_rows=16384, out_dtype=None,
                  param_dtype=None):
    """Convenience wrapper taking torch-layout params (W: (out, in))."""
    if param_dtype is None:
        param_dtype = x.dtype
    w1p, b1p, w2p, b2p = pack_fcnet_params(W1, b1, W2, b2, dtype=param_dtype)
    return fcnet_forward_packed(x, w1p, b1p, w2p, b2p,
                                block_rows=block_rows, out_dtype=out_dtype)


def init_fcnet_params(key, M, C, r):
    """Deterministic init mimicking nn.Linear shapes (W: (out,in), b: (out,))."""
    H = C // r
    k1, k2, k3, k4 = jax.random.split(key, 4)
    lim1 = 1.0 / jnp.sqrt(M)
    lim2 = 1.0 / jnp.sqrt(H)
    W1 = jax.random.uniform(k1, (H, M), jnp.float32, -lim1, lim1)
    b1 = jax.random.uniform(k2, (H,), jnp.float32, -lim1, lim1)
    W2 = jax.random.uniform(k3, (C, H), jnp.float32, -lim2, lim2)
    b2 = jax.random.uniform(k4, (C,), jnp.float32, -lim2, lim2)
    return W1, b1, W2, b2


def fcnet_reference(x, W1, b1, W2, b2):
    """Plain-JAX reference matching torch semantics (y = x @ W.T + b)."""
    h = x.astype(jnp.float32) @ W1.T + b1
    h = jnp.where(h > 0, h, 0.05 * h)
    return h @ W2.T + b2


if __name__ == "__main__":
    # FCNet((M, C, r)) with small shapes: hidden = C // r = 8.
    M, C, r = 16, 32, 4

    key = jax.random.PRNGKey(0)
    kx, kp, kx2 = jax.random.split(key, 3)
    W1, b1, W2, b2 = init_fcnet_params(kp, M, C, r)

    # --- Test 1: small batch (multiple of 8), single grid step, f32. ---
    B = 64
    x = jax.random.normal(kx, (B, M), jnp.float32)
    out = fcnet_forward(x, W1, b1, W2, b2)
    out = jax.block_until_ready(out)
    ref = fcnet_reference(x, W1, b1, W2, b2)
    assert out.shape == (B, C)
    assert out.dtype == jnp.float32
    assert jnp.allclose(out, ref, atol=1e-5, rtol=1e-5)

    # --- Test 2: larger batch, several grid steps + ragged last block, f32. ---
    B2 = 1000                          # multiple of 8 -> zero-copy packing path
    x2 = jax.random.normal(kx2, (B2, M), jnp.float32)
    out2 = fcnet_forward(x2, W1, b1, W2, b2, block_rows=256)
    out2 = jax.block_until_ready(out2)
    ref2 = fcnet_reference(x2, W1, b1, W2, b2)
    assert out2.shape == (B2, C)
    assert jnp.allclose(out2, ref2, atol=1e-5, rtol=1e-5)

    # --- Test 3: caller-supplied bf16 activations/weights, bf16 output. ---
    x2_bf16 = x2.astype(jnp.bfloat16)  # caller supplies bf16; wrapper never casts x
    w1p, b1p, w2p, b2p = pack_fcnet_params(W1, b1, W2, b2, dtype=jnp.bfloat16)
    out3 = fcnet_forward_packed(x2_bf16, w1p, b1p, w2p, b2p, block_rows=256)
    out3 = jax.block_until_ready(out3)
    assert out3.shape == (B2, C)
    assert out3.dtype == jnp.bfloat16
    assert jnp.allclose(out3.astype(jnp.float32), ref2, atol=5e-2, rtol=5e-2)

    # --- Test 4: batch not a multiple of 8 -> pad/slice fallback path. ---
    B4 = 203
    x4 = jax.random.normal(kx, (B4, M), jnp.float32)
    out4 = fcnet_forward(x4, W1, b1, W2, b2)
    out4 = jax.block_until_ready(out4)
    ref4 = fcnet_reference(x4, W1, b1, W2, b2)
    assert out4.shape == (B4, C)
    assert jnp.allclose(out4, ref4, atol=1e-5, rtol=1e-5)

    print("KERNEL_OK")
</pallas_src>

<mosaic_0001>
module attributes {stable_mosaic.version = 11 : i64} {
  func.func @_fcnet_kernel(%arg0: i32, %arg1: memref<8x128xf32, #tpu.memory_space<vmem>>, %arg2: memref<128x64xf32, #tpu.memory_space<vmem>>, %arg3: memref<1x64xf32, #tpu.memory_space<vmem>>, %arg4: memref<64x256xf32, #tpu.memory_space<vmem>>, %arg5: memref<1x256xf32, #tpu.memory_space<vmem>>, %arg6: memref<8x256xf32, #tpu.memory_space<vmem>>) attributes {dimension_semantics = [#tpu.dimension_semantics<parallel>], iteration_bounds = array<i64: 1>, scalar_prefetch = 0 : i64, scratch_operands = 0 : i64, tpu.core_type = #tpu.core_type<tc>, window_params = [{transform_indices = @transform_0, window_bounds = array<i64: 8, 128>}, {pipeline_mode = #tpu.pipeline_mode<synchronous>, transform_indices = @transform_1, window_bounds = array<i64: 128, 64>}, {pipeline_mode = #tpu.pipeline_mode<synchronous>, transform_indices = @transform_2, window_bounds = array<i64: 1, 64>}, {pipeline_mode = #tpu.pipeline_mode<synchronous>, transform_indices = @transform_3, window_bounds = array<i64: 64, 256>}, {pipeline_mode = #tpu.pipeline_mode<synchronous>, transform_indices = @transform_4, window_bounds = array<i64: 1, 256>}, {transform_indices = @transform_5, window_bounds = array<i64: 8, 256>}]} {
    %c0 = arith.constant 0 : index
    %c0_0 = arith.constant 0 : index
    %0 = vector.load %arg1[%c0, %c0_0] : memref<8x128xf32, #tpu.memory_space<vmem>>, vector<8x128xf32>
    %c0_1 = arith.constant 0 : index
    %c0_2 = arith.constant 0 : index
    %1 = vector.load %arg2[%c0_1, %c0_2] : memref<128x64xf32, #tpu.memory_space<vmem>>, vector<128x64xf32>
    %cst = arith.constant dense<0.000000e+00> : vector<8x64xf32>
    %2 = tpu.matmul %0, %1, %cst {dimension_numbers = #tpu.dot_dimension_numbers<[1], [0], [0], [1], [0, 0, 1, 1], [], []>} : vector<8x128xf32>, vector<128x64xf32>, vector<8x64xf32> -> vector<8x64xf32>
    %c0_3 = arith.constant 0 : index
    %c0_4 = arith.constant 0 : index
    %3 = vector.load %arg3[%c0_3, %c0_4] : memref<1x64xf32, #tpu.memory_space<vmem>>, vector<1x64xf32>
    %4 = vector.broadcast %3 : vector<1x64xf32> to vector<8x64xf32>
    %5 = arith.addf %2, %4 : vector<8x64xf32>
    %cst_5 = arith.constant 0.000000e+00 : f32
    %6 = vector.broadcast %cst_5 : f32 to vector<8x64xf32>
    %7 = arith.cmpf ogt, %5, %6 : vector<8x64xf32>
    %cst_6 = arith.constant 5.000000e-02 : f32
    %8 = vector.broadcast %cst_6 : f32 to vector<8x64xf32>
    %9 = arith.mulf %8, %5 : vector<8x64xf32>
    %10 = arith.select %7, %5, %9 : vector<8x64xi1>, vector<8x64xf32>
    %c0_7 = arith.constant 0 : index
    %c0_8 = arith.constant 0 : index
    %11 = vector.load %arg4[%c0_7, %c0_8] : memref<64x256xf32, #tpu.memory_space<vmem>>, vector<64x256xf32>
    %cst_9 = arith.constant dense<0.000000e+00> : vector<8x256xf32>
    %12 = tpu.matmul %10, %11, %cst_9 {dimension_numbers = #tpu.dot_dimension_numbers<[1], [0], [0], [1], [0, 0, 1, 1], [], []>} : vector<8x64xf32>, vector<64x256xf32>, vector<8x256xf32> -> vector<8x256xf32>
    %c0_10 = arith.constant 0 : index
    %c0_11 = arith.constant 0 : index
    %13 = vector.load %arg5[%c0_10, %c0_11] : memref<1x256xf32, #tpu.memory_space<vmem>>, vector<1x256xf32>
    %14 = vector.broadcast %13 : vector<1x256xf32> to vector<8x256xf32>
    %15 = arith.addf %12, %14 : vector<8x256xf32>
    %c0_12 = arith.constant 0 : index
    %c0_13 = arith.constant 0 : index
    %16 = vector.load %arg6[%c0_12, %c0_13] : memref<8x256xf32, #tpu.memory_space<vmem>>, vector<8x256xf32>
    tpu.vector_store %arg6[%c0_12, %c0_13], %15 {strides = array<i32>} : memref<8x256xf32, #tpu.memory_space<vmem>>, vector<8x256xf32>,
    return
  }
  func.func @transform_0(%arg0: i32) -> (i32, i32) {
    %c0_i32 = arith.constant 0 : i32
    %c0_i32_0 = arith.constant 0 : i32
    return %arg0, %c0_i32 : i32, i32
  }
  func.func @transform_1(%arg0: i32) -> (i32, i32) {
    %c0_i32 = arith.constant 0 : i32
    %c0_i32_0 = arith.constant 0 : i32
    %c0_i32_1 = arith.constant 0 : i32
    return %c0_i32, %c0_i32_0 : i32, i32
  }
  func.func @transform_2(%arg0: i32) -> (i32, i32) {
    %c0_i32 = arith.constant 0 : i32
    %c0_i32_0 = arith.constant 0 : i32
    %c0_i32_1 = arith.constant 0 : i32
    return %c0_i32, %c0_i32_0 : i32, i32
  }
  func.func @transform_3(%arg0: i32) -> (i32, i32) {
    %c0_i32 = arith.constant 0 : i32
    %c0_i32_0 = arith.constant 0 : i32
    %c0_i32_1 = arith.constant 0 : i32
    return %c0_i32, %c0_i32_0 : i32, i32
  }
  func.func @transform_4(%arg0: i32) -> (i32, i32) {
    %c0_i32 = arith.constant 0 : i32
    %c0_i32_0 = arith.constant 0 : i32
    %c0_i32_1 = arith.constant 0 : i32
    return %c0_i32, %c0_i32_0 : i32, i32
  }
  func.func @transform_5(%arg0: i32) -> (i32, i32) {
    %c0_i32 = arith.constant 0 : i32
    %c0_i32_0 = arith.constant 0 : i32
    return %arg0, %c0_i32 : i32, i32
  }
}

</mosaic_0001>

<bundles_post_ra>
// kernel: tpu_custom_call.1
= control target key start
LH: loop header
LB: loop body
LE: loop exit
PB: predicated region body
PF: predicated region fallthrough
CT: control target
= control target key end

     0   :  { %v359_v3 = vmov 0.0|0.0   ;;  %vm360_vm0 = vmmov 0   ;;  %v361_v6 = vmov 0.0   ;;  %s518_s0 = inlined_call_operand.vmem [shape: f32[8,128], index: 0, kind: input, shape index: {}]   ;;  %s519_s1 = inlined_call_operand.vmem [shape: f32[128,64], index: 1, kind: input, shape index: {}]   ;;  %s520_s2 = inlined_call_operand.vmem [shape: f32[1,64], index: 2, kind: input, shape index: {}]   ;;  %s521_s3 = inlined_call_operand.vmem [shape: f32[64,256], index: 3, kind: input, shape index: {}]   ;;  %s522_s4 = inlined_call_operand.vmem [shape: f32[1,256], index: 4, kind: input, shape index: {}]   ;;  %s523_s5 = inlined_call_operand.hbm [shape: f32[8,256], index: 5, kind: output, shape index: {}]  }
   0x1   :  { %v22_v0 = vld [vmem:[%s519_s1] sm:$0xff]  ;;  %v23_v1 = vld [vmem:[%s519_s1 + $0x8] sm:$0xff]  ;;  %v24_v2 = vld [vmem:[%s519_s1 + $0x10] sm:$0xff]  ;;  %291 = vmatprep.subr.bf16.mxu0 %v359_v3  ;;  %288 = vmatprep.mubr.msk.f32.mxu0 %vm360_vm0, %v361_v6 }
   0x2   :  { %v292_v4 = vpack.c.bf16 %v23_v1, %v22_v0  ;;  %v25_v5 = vld [vmem:[%s519_s1 + $0x18] sm:$0xff]  ;;  %214 = vmatprep.mubr.f32.mxu1 %v361_v6  ;;  %v26_v8 = vld [vmem:[%s519_s1 + $0x20] sm:$0xff]  ;;  %v27_v9 = vld [vmem:[%s519_s1 + $0x28] sm:$0xff] }
   0x3   :  { %v295_v7 = vpack.c.bf16 %v25_v5, %v24_v2  ;;  %v119_v10 = vld [vmem:[%s521_s3 + $0x8] sm:$0xff]  ;;  %v28_v11 = vld [vmem:[%s519_s1 + $0x30] sm:$0xff]  ;;  %v29_v12 = vld [vmem:[%s519_s1 + $0x38] sm:$0xff]  ;;  %v298_v16 = vpack.c.bf16 %v27_v9, %v26_v8 }
   0x4   :  { %293 = vmatpush3.bf16.msra.mxu0 %v292_v4  ;;  %v121_v13 = vld [vmem:[%s521_s3 + $0x18] sm:$0xff]  ;;  %v118_v14 = vld [vmem:[%s521_s3] sm:$0xff]  ;;  %v120_v15 = vld [vmem:[%s521_s3 + $0x10] sm:$0xff] }
   0x5   :  { %294 = vmatprep.subr.bf16.mxu0 %v359_v3  ;;  %v315_v17 = vpack.c.bf16 %v121_v13, %v119_v10  ;;  %v317_v18 = vpack.c.bf16 %v120_v15, %v118_v14  ;;  %v123_v19 = vld [vmem:[%s521_s3 + $0x28] sm:$0xff]  ;;  %v125_v20 = vld [vmem:[%s521_s3 + $0x38] sm:$0xff]  ;;  %v122_v21 = vld [vmem:[%s521_s3 + $0x20] sm:$0xff] }
   0x6   :  { %v319_v22 = vpack.c.bf16 %v125_v20, %v123_v19  ;;  %v124_v23 = vld [vmem:[%s521_s3 + $0x30] sm:$0xff]  ;;  %v127_v24 = vld [vmem:[%s521_s3 + $0x48] sm:$0xff]  ;;  %v129_v25 = vld [vmem:[%s521_s3 + $0x58] sm:$0xff] }
   0x7   :  { %316 = vmatprep.subr.bf16.mxu1 %v315_v17  ;;  %v321_v26 = vpack.c.bf16 %v124_v23, %v122_v21 }
   0x8   :  { %296 = vmatpush3.bf16.msra.mxu0 %v295_v7  ;;  %318 = vmatpush1.bf16.msra.mxu1 %v317_v18 }
   0x9   :  { %297 = vmatprep.subr.bf16.mxu0 %v359_v3 }
   0xa   :  { %10 = vsyncpa [#allocation3], 0  ;;  %v301_v27 = vpack.c.bf16 %v29_v12, %v28_v11  ;;  %320 = vmatprep.subr.bf16.mxu1 %v319_v22  ;;  %v323_v28 = vpack.c.bf16 %v129_v25, %v127_v24  ;;  %v126_v29 = vld [vmem:[%s521_s3 + $0x40] sm:$0xff]  ;;  %v128_v30 = vld [vmem:[%s521_s3 + $0x50] sm:$0xff]  ;;  %vm146_vm2 = vcmask 523264   ;;  %v136_v57 = vlaneseq  ;;  %s362_s10 = smov [#allocation2]  }
   0xb   :  { %v30_v31 = vld [vmem:[%s519_s1 + $0x40] sm:$0xff]  ;;  %v31_v32 = vld [vmem:[%s519_s1 + $0x48] sm:$0xff]  ;;  %v325_v33 = vpack.c.bf16 %v128_v30, %v126_v29  ;;  %v32_v35 = vld [vmem:[%s519_s1 + $0x50] sm:$0xff] }
   0xc   :  { %299 = vmatpush3.bf16.msra.mxu0 %v298_v16  ;;  %322 = vmatpush1.bf16.msra.mxu1 %v321_v26  ;;  %v304_v34 = vpack.c.bf16 %v31_v32, %v30_v31  ;;  %v33_v36 = vld [vmem:[%s519_s1 + $0x58] sm:$0xff]  ;;  %v34_v38 = vld [vmem:[%s519_s1 + $0x60] sm:$0xff]  ;;  %v35_v39 = vld [vmem:[%s519_s1 + $0x68] sm:$0xff]  ;;  %v137_v58 = vshrl.u32 %v136_v57, 7 }
   0xd   :  { %300 = vmatprep.subr.bf16.mxu0 %v359_v3  ;;  %324 = vmatprep.subr.bf16.mxu1 %v323_v28  ;;  %v307_v37 = vpack.c.bf16 %v33_v36, %v32_v35  ;;  %v310_v40 = vpack.c.bf16 %v35_v39, %v34_v38  ;;  %v36_v41 = vld [vmem:[%s519_s1 + $0x70] sm:$0xff]  ;;  %v37_v42 = vld [vmem:[%s519_s1 + $0x78] sm:$0xff]  ;;  %v21_v44 = vld [vmem:[%s518_s0] sm:$0xff] }
   0xe   :  { %v313_v43 = vpack.c.bf16 %v37_v42, %v36_v41  ;;  %v131_v45 = vld [vmem:[%s521_s3 + $0x68] sm:$0xff]  ;;  %v133_v46 = vld [vmem:[%s521_s3 + $0x78] sm:$0xff]  ;;  %v130_v48 = vld [vmem:[%s521_s3 + $0x60] sm:$0xff]  ;;  %v138_v59 = vsub.s32 0, %v137_v58  ;;  %v142_v61 = vsub.s32 1, %v137_v58 }
   0xf   :  { %v327_v47 = vpack.c.bf16 %v133_v46, %v131_v45  ;;  %v132_v49 = vld [vmem:[%s521_s3 + $0x70] sm:$0xff]  ;;  %v237_v51 = vld [vmem:[%s520_s2] ss:$0 sm:$0xff]  ;;  %s229_s2 = sshll.u32 %s362_s10, 4  ;;  %s230_s2 = int_to_ptr.vmem [resolvable:$true] %s229_s2 }
  0x10   :  { %302 = vmatpush3.bf16.msra.mxu0 %v301_v27  ;;  %326 = vmatpush1.bf16.msra.mxu1 %v325_v33  ;;  %v329_v50 = vpack.c.bf16 %v132_v49, %v130_v48  ;;  %v134_v60 = vld [vmem:[%s522_s4] sm:$0x3]  ;;  %s335_s11 = scalar_lea.vmem %s230_s2, 256  ;;  %p340_p1 = scmp.lt.s32.totalorder %s230_s2, %s230_s2 }
  0x11   :  { %303 = vmatprep.subr.bf16.mxu0 %v359_v3  ;;  %328 = vmatprep.subr.bf16.mxu1 %v327_v47  ;;  %v139_v62 = vrot.slane %v134_v60, %v138_v59  ;;  %v143_v63 = vrot.slane %v134_v60, %v142_v61  ;;  %p336_p0 = scmp.ne.s32.totalorder %s230_s2, %s335_s11  ;;  %p341_p2 = scmp.lt.s32.totalorder %s335_s11, %s335_s11 }
  0x13   :  { %p342_p3 = por %p341_p2, %p340_p1 }
  0x14   :  { %305 = vmatpush3.bf16.msra.mxu0 %v304_v34  ;;  %330 = vmatpush1.bf16.msra.mxu1 %v329_v50 }
  0x15   :  { %306 = vmatprep.subr.bf16.mxu0 %v359_v3  ;;  %p343_p4 = pnand %p342_p3, %p336_p0 }
  0x18   :  { %308 = vmatpush3.bf16.msra.mxu0 %v307_v37 }
  0x19   :  { %309 = vmatprep.subr.bf16.mxu0 %v359_v3 }
  0x1c   :  { %311 = vmatpush3.bf16.msra.mxu0 %v310_v40 }
  0x1d   :  { %312 = vmatprep.subr.bf16.mxu0 %v359_v3 }
  0x20   :  { %314 = vmatpush3.bf16.msra.mxu0 %v313_v43 }
  0x23   :  { %289 = vmatmul.mubr.f32.vlgmr.msra.gmra.mrb[0].mxu0 %v21_v44 }
  0xf6   :  { %v111_v52 = vpop.f32.mrb[0].mxu0 }
  0xf7   :  { %v112_v53 = vadd.f32 %v237_v51, %v111_v52  ;;  %v290_v54 = vpop.f32.mrb[1].mxu0 }
  0xf9   :  { %vm115_vm1 = vcmp.gt.f32.partialorder %v112_v53, 0.0  ;;  %v116_v55 = vmul.f32 0.05, %v112_v53 }
  0xfb   :  { %v117_v56 = vsel %vm115_vm1, %v112_v53, %v116_v55 }
  0xfc   :  { %238 = vmatmul.mubr.msk.f32.vlgmr.msra.gmra.mrb[0].mxu1 %vm146_vm2, %v117_v56 }
 0x1cf   :  { %v216_v0 = vpop.f32.mrb[0].mxu1 }
 0x1d0   :  { %v217_v1 = vadd.f32 %v216_v0, %v139_v62  ;;  %v218_v2 = vpop.f32.mrb[1].mxu1 }
 0x1d1   :  { %v219_v3 = vadd.f32 %v218_v2, %v143_v63 }
 0x1d2   :  { %221 = vst [vmem:[#allocation2] sm:$0xff] %v217_v1 }
 0x1d3   :  { %222 = vst [vmem:[#allocation2 + $0x8] sm:$0xff] %v219_v3 }
 0x1d4   :  { %346 = shalt.err (!%p343_p4)
}
 0x1d5   :  { %s347_s13 = scalar_lea.hbm %s523_s5, 256 }
 0x1d6   :  { %p348_p5 = scmp.ne.s32.totalorder %s523_s5, %s347_s13  ;;  %p351_p6 = scmp.lt.u32.totalorder %s347_s13, %s523_s5 }
 0x1d8   :  { %p353_p7 = pnand %p351_p6, %p348_p5 }
 0x1da   :  { %356 = shalt.err (!%p353_p7)
}
 0x1db   :  { %232 = dma.vmem_to_hbm [thread:$0]  %s230_s2, 256, %s523_s5, [#allocation3]  }
 0x1dc   :  { %357 = dma.done.wait [#allocation3], 256  }
 0x1dd   :  { %358 = vsyncadd [#allocation3], 4294967040 }
 0x1de   :  { %236 = vsyncpa [#allocation3], 1 }

</bundles_post_ra>
